<compile_context>
chip_gen: v7x
topology: tpu7x:2x2x1
jax: 0.10.0
libtpu: 0.0.40
codegen_flags: <defaults>
</compile_context>

<pallas_src>
import jax
import jax.numpy as jnp
from jax.experimental import pallas as pl
from jax.experimental.pallas import tpu as pltpu


def _round_up(x, m):
    return (x + m - 1) // m * m


def _tpu_vmem_capacity_bytes(default=128 * 1024 * 1024):
    """Per-generation VMEM capacity (v5e/v6e: 128 MiB; v7x: 64 MiB per TC)."""
    try:
        info = pltpu.get_tpu_info()
        cap = int(getattr(info, "vmem_capacity_bytes", 0) or 0)
        if cap > 0:
            return cap
    except Exception:
        pass
    return default


def _choose_tm(m_rows, k_pad, e_pad, budget_bytes):
    """Largest M tile whose working set fits the VMEM budget.

    Accounting matches the pallas_call below: double-buffered bf16 patches tile,
    double-buffered bf16 output tile, single-buffered (pl.Buffered(1)) bf16
    weight and f32 bias.  Prefers a tile that divides m_rows so no M padding
    (and no post-kernel slice copy along M) is needed.
    """
    full = _round_up(m_rows, 8)
    fitting = []
    for tm in (2048, 1024, 512, 256, 128, 64, 32, 16, 8):
        if tm > full:
            continue
        need = (
            2 * tm * k_pad * 2      # double-buffered bf16 patches tile
            + 2 * tm * e_pad * 2    # double-buffered bf16 output tile
            + k_pad * e_pad * 2     # resident bf16 weight (single-buffered)
            + e_pad * 4             # resident f32 bias
        )
        if need <= budget_bytes:
            fitting.append(tm)
    if not fitting:
        return 8
    for tm in fitting:              # prefer a divisor of M (no padding needed)
        if m_rows % tm == 0:
            return tm
    return fitting[0]


def _patch_embed_kernel(p_ref, w_ref, b_ref, o_ref):
    """One full-K MXU contraction per M tile; f32 accumulate + f32 bias epilogue."""
    acc = jnp.dot(p_ref[...], w_ref[...], preferred_element_type=jnp.float32)
    o_ref[...] = (acc + b_ref[...]).astype(o_ref.dtype)


def patch_embed(x, weight, bias, patch_size):
    """x: (B, C, H, W) NCHW; weight: (E, C, pH, pW); bias: (E,) -> (B, N, E) bf16."""
    B, C, H, W = x.shape
    E = weight.shape[0]
    p = patch_size
    assert H % p == 0 and W % p == 0
    nH, nW = H // p, W // p
    N = nH * nW
    K = C * p * p
    M = B * N

    # im2col: cast to bf16 FIRST so the single XLA copy that materializes the
    # patches buffer writes bf16 (half the HBM bytes of an f32 intermediate).
    # K is flattened in (pH, pW, C) order; the conv weight is permuted to match.
    x_bf = x.astype(jnp.bfloat16)
    patches = (
        jnp.transpose(x_bf, (0, 2, 3, 1))                 # (B, H, W, C)
        .reshape(B, nH, p, nW, p, C)
        .transpose(0, 1, 3, 2, 4, 5)                      # (B, nH, nW, pH, pW, C)
        .reshape(M, K)
    )
    w2d = jnp.transpose(weight, (2, 3, 1, 0)).reshape(K, E)   # (pH, pW, C, E) -> (K, E)

    # Pad K and E to lane-dense multiples of 128 (zero padding is exact).
    K_pad = _round_up(K, 128)
    E_pad = _round_up(E, 128)

    vmem_cap = _tpu_vmem_capacity_bytes()
    budget = min(vmem_cap // 2, 64 * 1024 * 1024)          # ~64 MiB v5e/v6e, 32 MiB v7x
    vmem_limit = int(min(vmem_cap * 3 // 4, 100 * 1024 * 1024))

    tm = _choose_tm(M, K_pad, E_pad, budget)
    M_pad = _round_up(M, tm)

    patches_p = jnp.pad(patches, ((0, M_pad - M), (0, K_pad - K)))          # bf16
    w2d_p = jnp.pad(w2d, ((0, K_pad - K), (0, E_pad - E))).astype(jnp.bfloat16)
    bias_p = jnp.pad(bias, (0, E_pad - E)).astype(jnp.float32).reshape(1, E_pad)

    # bf16 output: f32 MXU accumulate + f32 bias add stay in-kernel; only the
    # final store is bf16 (halves the largest per-step HBM stream).
    out_dtype = jnp.bfloat16
    grid = (M_pad // tm,)

    cost = pl.CostEstimate(
        flops=2 * M_pad * K_pad * E_pad,
        transcendentals=0,
        bytes_accessed=(
            M_pad * K_pad * 2        # bf16 patches
            + K_pad * E_pad * 2      # bf16 weight
            + E_pad * 4              # f32 bias
            + M_pad * E_pad * 2      # bf16 output
        ),
    )

    out = pl.pallas_call(
        _patch_embed_kernel,
        out_shape=jax.ShapeDtypeStruct((M_pad, E_pad), out_dtype),
        grid_spec=pltpu.PrefetchScalarGridSpec(
            num_scalar_prefetch=0,
            grid=grid,
            in_specs=[
                # Patches tile: streamed, default double-buffering.
                # (Bump to pl.Buffered(3) if traces show exposed input DMA.)
                pl.BlockSpec((tm, K_pad), lambda m: (m, 0)),
                # Resident weight / bias: constant index_map, so a second
                # pipeline buffer would be pure wasted VMEM -> Buffered(1).
                pl.BlockSpec((K_pad, E_pad), lambda m: (0, 0),
                             pipeline_mode=pl.Buffered(buffer_count=1)),
                pl.BlockSpec((1, E_pad), lambda m: (0, 0),
                             pipeline_mode=pl.Buffered(buffer_count=1)),
            ],
            out_specs=pl.BlockSpec((tm, E_pad), lambda m: (m, 0)),
        ),
        compiler_params=pltpu.CompilerParams(
            # TODO(synk): on v7x (2 TensorCores/chip) switch the M axis to
            # pltpu.CORE_PARALLEL (or pl.core_map over a 2-core mesh) to
            # actually shard rows across both TCs.
            dimension_semantics=("parallel",),
            vmem_limit_bytes=vmem_limit,
        ),
        cost_estimate=cost,
    )(patches_p, w2d_p, bias_p)

    if M_pad == M and E_pad == E:
        return out.reshape(B, N, E)          # nothing padded -> no slice copy
    return out[:M, :E].reshape(B, N, E)


if __name__ == "__main__":
    # Small shapes consistent with the module: B=2, C=4, H=W=16, patch=8, E=32.
    B, C, H, W = 2, 4, 16, 16
    patch_size = 8
    embed_dim = 32

    key = jax.random.PRNGKey(0)
    kx, kw, kb = jax.random.split(key, 3)
    x = jax.random.normal(kx, (B, C, H, W), dtype=jnp.float32)
    # Deterministic synthetic Conv2d parameters (same shapes as nn.Conv2d).
    weight = jax.random.normal(
        kw, (embed_dim, C, patch_size, patch_size), dtype=jnp.float32
    ) * 0.02
    bias = jax.random.normal(kb, (embed_dim,), dtype=jnp.float32) * 0.02

    out = patch_embed(x, weight, bias, patch_size)
    out = jax.block_until_ready(out)

    # Reference check (pure JAX, f32) for the conv-as-matmul semantics.
    nH, nW = H // patch_size, W // patch_size
    patches_ref = (
        x.reshape(B, C, nH, patch_size, nW, patch_size)
        .transpose(0, 2, 4, 1, 3, 5)
        .reshape(B, nH * nW, C * patch_size * patch_size)
    )
    ref = patches_ref @ weight.reshape(embed_dim, -1).T + bias
    assert out.shape == (B, nH * nW, embed_dim)
    assert out.dtype == jnp.bfloat16
    out_f32 = out.astype(jnp.float32)
    # bf16 inputs on the MXU (f32 accumulation) + bf16 output store -> loosened
    # tolerance vs. the f32 reference.
    err = float(jnp.max(jnp.abs(out_f32 - ref)))
    assert jnp.allclose(out_f32, ref, atol=3e-2, rtol=3e-2), err

    print("KERNEL_OK")
</pallas_src>

<mosaic_0001>
module attributes {stable_mosaic.version = 11 : i64} {
  func.func @_patch_embed_kernel(%arg0: i32, %arg1: memref<8x256xbf16, #tpu.memory_space<vmem>>, %arg2: memref<256x128xbf16, #tpu.memory_space<vmem>>, %arg3: memref<1x128xf32, #tpu.memory_space<vmem>>, %arg4: memref<8x128xbf16, #tpu.memory_space<vmem>>) attributes {dimension_semantics = [#tpu.dimension_semantics<parallel>], iteration_bounds = array<i64: 1>, scalar_prefetch = 0 : i64, scratch_operands = 0 : i64, tpu.core_type = #tpu.core_type<tc>, window_params = [{transform_indices = @transform_0, window_bounds = array<i64: 8, 256>}, {pipeline_mode = #tpu.pipeline_mode<synchronous>, transform_indices = @transform_1, window_bounds = array<i64: 256, 128>}, {pipeline_mode = #tpu.pipeline_mode<synchronous>, transform_indices = @transform_2, window_bounds = array<i64: 1, 128>}, {transform_indices = @transform_3, window_bounds = array<i64: 8, 128>}]} {
    %c0 = arith.constant 0 : index
    %c0_0 = arith.constant 0 : index
    %0 = vector.load %arg1[%c0, %c0_0] : memref<8x256xbf16, #tpu.memory_space<vmem>>, vector<8x256xbf16>
    %c0_1 = arith.constant 0 : index
    %c0_2 = arith.constant 0 : index
    %1 = vector.load %arg2[%c0_1, %c0_2] : memref<256x128xbf16, #tpu.memory_space<vmem>>, vector<256x128xbf16>
    %cst = arith.constant dense<0.000000e+00> : vector<8x128xf32>
    %2 = tpu.matmul %0, %1, %cst {dimension_numbers = #tpu.dot_dimension_numbers<[1], [0], [0], [1], [0, 0, 1, 1], [], []>} : vector<8x256xbf16>, vector<256x128xbf16>, vector<8x128xf32> -> vector<8x128xf32>
    %c0_3 = arith.constant 0 : index
    %c0_4 = arith.constant 0 : index
    %3 = vector.load %arg3[%c0_3, %c0_4] : memref<1x128xf32, #tpu.memory_space<vmem>>, vector<1x128xf32>
    %4 = vector.broadcast %3 : vector<1x128xf32> to vector<8x128xf32>
    %5 = arith.addf %2, %4 : vector<8x128xf32>
    %6 = arith.truncf %5 : vector<8x128xf32> to vector<8x128xbf16>
    %c0_5 = arith.constant 0 : index
    %c0_6 = arith.constant 0 : index
    %7 = vector.load %arg4[%c0_5, %c0_6] : memref<8x128xbf16, #tpu.memory_space<vmem>>, vector<8x128xbf16>
    tpu.vector_store %arg4[%c0_5, %c0_6], %6 {strides = array<i32>} : memref<8x128xbf16, #tpu.memory_space<vmem>>, vector<8x128xbf16>,
    return
  }
  func.func @transform_0(%arg0: i32) -> (i32, i32) {
    %c0_i32 = arith.constant 0 : i32
    %c0_i32_0 = arith.constant 0 : i32
    return %arg0, %c0_i32 : i32, i32
  }
  func.func @transform_1(%arg0: i32) -> (i32, i32) {
    %c0_i32 = arith.constant 0 : i32
    %c0_i32_0 = arith.constant 0 : i32
    %c0_i32_1 = arith.constant 0 : i32
    return %c0_i32, %c0_i32_0 : i32, i32
  }
  func.func @transform_2(%arg0: i32) -> (i32, i32) {
    %c0_i32 = arith.constant 0 : i32
    %c0_i32_0 = arith.constant 0 : i32
    %c0_i32_1 = arith.constant 0 : i32
    return %c0_i32, %c0_i32_0 : i32, i32
  }
  func.func @transform_3(%arg0: i32) -> (i32, i32) {
    %c0_i32 = arith.constant 0 : i32
    %c0_i32_0 = arith.constant 0 : i32
    return %arg0, %c0_i32 : i32, i32
  }
}

</mosaic_0001>

<bundles_post_ra>
// kernel: tpu_custom_call.1
= control target key start
LH: loop header
LB: loop body
LE: loop exit
PB: predicated region body
PF: predicated region fallthrough
CT: control target
= control target key end

     0   :  { %8 = vsyncpa [#allocation3], 0  ;;  %s487_s0 = inlined_call_operand.hbm [shape: bf16[8,256], index: 0, kind: input, shape index: {}]   ;;  %s488_s1 = inlined_call_operand.hbm [shape: bf16[256,128], index: 1, kind: input, shape index: {}]   ;;  %s489_s2 = inlined_call_operand.hbm [shape: f32[1,128], index: 2, kind: input, shape index: {}]   ;;  %s490_s3 = inlined_call_operand.hbm [shape: bf16[8,128], index: 3, kind: output, shape index: {}]  }
   0x1   :  { %9 = vsyncpa [#allocation6], 0 }
   0x2   :  { %10 = vsyncpa [#allocation4], 0  ;;  %s413_s12 = smov [#allocation5]   ;;  %s319_s16 = scalar_lea.hbm %s488_s1, 2048 }
   0x3   :  { %s26_s13 = sshll.u32 %s413_s12, 4  ;;  %p320_p0 = scmp.ne.s32.totalorder %s488_s1, %s319_s16  ;;  %s27_s13 = int_to_ptr.vmem [resolvable:$true] %s26_s13 }
   0x4   :  { %p323_p1 = scmp.lt.u32.totalorder %s319_s16, %s488_s1 }
   0x6   :  { %p325_p2 = pnand %p323_p1, %p320_p0 }
   0x8   :  { %328 = shalt.err (!%p325_p2)
}
   0x9   :  { %s329_s21 = scalar_lea.vmem %s27_s13, 2048  ;;  %p334_p4 = scmp.lt.s32.totalorder %s27_s13, %s27_s13 }
   0xa   :  { %p330_p3 = scmp.ne.s32.totalorder %s27_s13, %s329_s21  ;;  %p335_p5 = scmp.lt.s32.totalorder %s329_s21, %s329_s21 }
   0xc   :  { %p336_p6 = por %p335_p5, %p334_p4 }
   0xe   :  { %p337_p7 = pnand %p336_p6, %p330_p3 }
  0x10   :  { %340 = shalt.err (!%p337_p7)
}
  0x11   :  { %s414_s22 = smov 64   ;;  %s415_s23 = smov 4  }
  0x12   :  { %32 = dma.hbm_to_vmem [thread:$0]  %s488_s1, 2048, %s27_s13, [#allocation6], %s414_s22, %s414_s22, %s415_s23  }
  0x13   :  { %s416_s26 = smov [#allocation2]   ;;  %s417_s28 = smov [#allocation7]  }
  0x14   :  { %s17_s27 = sshll.u32 %s416_s26, 4  ;;  %s39_s29 = sshll.u32 %s417_s28, 4  ;;  %s18_s27 = int_to_ptr.vmem [resolvable:$true] %s17_s27  ;;  %s40_s29 = int_to_ptr.vmem [resolvable:$true] %s39_s29 }
  0x15   :  { %s341_s5 = scalar_lea.hbm %s487_s0, 128 }
  0x16   :  { %p342_p8 = scmp.ne.s32.totalorder %s487_s0, %s341_s5  ;;  %p345_p9 = scmp.lt.u32.totalorder %s341_s5, %s487_s0 }
  0x18   :  { %p347_p10 = pnand %p345_p9, %p342_p8 }
  0x1a   :  { %350 = shalt.err (!%p347_p10)
}
  0x1b   :  { %s351_s1 = scalar_lea.vmem %s18_s27, 128  ;;  %p356_p12 = scmp.lt.s32.totalorder %s18_s27, %s18_s27 }
  0x1c   :  { %p352_p11 = scmp.ne.s32.totalorder %s18_s27, %s351_s1  ;;  %p357_p13 = scmp.lt.s32.totalorder %s351_s1, %s351_s1 }
  0x1e   :  { %p358_p0 = por %p357_p13, %p356_p12 }
  0x20   :  { %p359_p1 = pnand %p358_p0, %p352_p11 }
  0x22   :  { %362 = shalt.err (!%p359_p1)
}
  0x23   :  { %20 = dma.hbm_to_vmem [thread:$0]  %s487_s0, 128, %s18_s27, [#allocation3]  }
  0x24   :  { %s363_s14 = scalar_lea.hbm %s489_s2, 16 }
  0x25   :  { %p364_p2 = scmp.ne.s32.totalorder %s489_s2, %s363_s14  ;;  %p367_p3 = scmp.lt.u32.totalorder %s363_s14, %s489_s2 }
  0x27   :  { %p369_p4 = pnand %p367_p3, %p364_p2 }
  0x29   :  { %372 = shalt.err (!%p369_p4)
}
  0x2a   :  { %s373_s19 = scalar_lea.vmem %s40_s29, 16  ;;  %s377_s20 = scalar_lea.vmem %s40_s29, 32 }
  0x2b   :  { %p374_p5 = scmp.ne.s32.totalorder %s40_s29, %s373_s19  ;;  %p378_p6 = scmp.lt.s32.totalorder %s40_s29, %s40_s29 }
  0x2c   :  { %p379_p7 = scmp.lt.s32.totalorder %s377_s20, %s373_s19 }
  0x2e   :  { %p380_p8 = por %p379_p7, %p378_p6 }
  0x30   :  { %p381_p9 = pnand %p380_p8, %p374_p5 }
  0x32   :  { %384 = shalt.err (!%p381_p9)
}
  0x33   :  { %42 = dma.hbm_to_vmem [thread:$0]  %s489_s2, 16, %s40_s29, [#allocation6]  }
  0x34   :  { %407 = dma.done.wait [#allocation3], 128  }
  0x35   :  { %408 = vsyncadd [#allocation3], 4294967168 }
  0x36   :  { %409 = dma.done.wait [#allocation6], 2064  }
  0x37   :  { %410 = vsyncadd [#allocation6], 4294965232  ;;  %v301_v0 = vld [vmem:[#allocation5 + $0x40] sm:$0xff]   ;;  %v303_v2 = vld [vmem:[#allocation5 + $0x48] sm:$0xff]   ;;  %s418_s2 = smov [#allocation8]  }
  0x38   :  { %v302_v1 = vld [vmem:[#allocation5] sm:$0xff]   ;;  %273 = vmatprep.subr.bf16.mxu0 %v301_v0  ;;  %v304_v3 = vld [vmem:[#allocation5 + $0x8] sm:$0xff]   ;;  %v305_v4 = vld [vmem:[#allocation5 + $0x50] sm:$0xff]   ;;  %s244_s22 = sshll.u32 %s418_s2, 4  ;;  %s245_s22 = int_to_ptr.vmem [resolvable:$true] %s244_s22 }
  0x39   :  { %274 = vmatpush3.bf16.msra.mxu0 %v302_v1  ;;  %v306_v5 = vld [vmem:[#allocation5 + $0x10] sm:$0xff]   ;;  %v307_v6 = vld [vmem:[#allocation5 + $0x58] sm:$0xff]   ;;  %v309_v8 = vld [vmem:[#allocation5 + $0x60] sm:$0xff]   ;;  %s385_s23 = scalar_lea.vmem %s245_s22, 64  ;;  %p390_p11 = scmp.lt.s32.totalorder %s245_s22, %s245_s22 }
  0x3a   :  { %275 = vmatprep.subr.bf16.mxu0 %v303_v2  ;;  %v308_v7 = vld [vmem:[#allocation5 + $0x18] sm:$0xff]   ;;  %v310_v9 = vld [vmem:[#allocation5 + $0x20] sm:$0xff]   ;;  %v311_v10 = vld [vmem:[#allocation5 + $0x68] sm:$0xff]   ;;  %p386_p10 = scmp.ne.s32.totalorder %s245_s22, %s385_s23  ;;  %p391_p12 = scmp.lt.s32.totalorder %s385_s23, %s385_s23 }
  0x3b   :  { %v53_v11 = vld [vmem:[#allocation2] sm:$0xff]  ;;  %v312_v13 = vld [vmem:[#allocation5 + $0x28] sm:$0xff]   ;;  %v313_v14 = vld [vmem:[#allocation5 + $0x70] sm:$0xff]  }
  0x3c   :  { %v256_v12 = vcombine.high %v53_v11, %v53_v11  ;;  %v314_v15 = vld [vmem:[#allocation5 + $0x30] sm:$0xff]   ;;  %v315_v16 = vld [vmem:[#allocation5 + $0x78] sm:$0xff]   ;;  %v255_v18 = vcombine.low %v53_v11, %v53_v11  ;;  %v254_v20 = vld [vmem:[#allocation7] ss:$0 sm:$0xff]  ;;  %p392_p13 = por %p391_p12, %p390_p11 }
  0x3d   :  { %276 = vmatpush3.bf16.msra.mxu0 %v304_v3  ;;  %v316_v17 = vld [vmem:[#allocation5 + $0x38] sm:$0xff]  }
  0x3e   :  { %277 = vmatprep.subr.bf16.mxu0 %v305_v4  ;;  %228 = vmatprep.mubr.bf16.mxu0 %v256_v12  ;;  %p393_p0 = pnand %p392_p13, %p386_p10 }
  0x41   :  { %278 = vmatpush3.bf16.msra.mxu0 %v306_v5 }
  0x42   :  { %279 = vmatprep.subr.bf16.mxu0 %v307_v6 }
  0x45   :  { %280 = vmatpush3.bf16.msra.mxu0 %v308_v7 }
  0x46   :  { %281 = vmatprep.subr.bf16.mxu0 %v309_v8 }
  0x49   :  { %282 = vmatpush3.bf16.msra.mxu0 %v310_v9 }
  0x4a   :  { %283 = vmatprep.subr.bf16.mxu0 %v311_v10 }
  0x4d   :  { %284 = vmatpush3.bf16.msra.mxu0 %v312_v13 }
  0x4e   :  { %285 = vmatprep.subr.bf16.mxu0 %v313_v14 }
  0x51   :  { %286 = vmatpush3.bf16.msra.mxu0 %v314_v15 }
  0x52   :  { %287 = vmatprep.subr.bf16.mxu0 %v315_v16 }
  0x55   :  { %288 = vmatpush3.bf16.msra.mxu0 %v316_v17 }
  0x58   :  { %229 = vmatmul.mubr.bf16.vlgmr.msra.gmra.mrb[0].mxu0 %v255_v18 }
 0x12b   :  { %v289_v19 = vpop.f32.mrb[0].mxu0 }
 0x12c   :  { %v290_v21 = vpop.f32.mrb[1].mxu0 }
 0x12d   :  { %v291_v22 = vadd.f32 %v290_v21, %v289_v19  ;;  %v292_v23 = vpop.f32.mrb[2].mxu0 }
 0x12e   :  { %v293_v24 = vpop.f32.mrb[3].mxu0 }
 0x12f   :  { %v231_v25 = vadd.f32 %v291_v22, %v254_v20 }
 0x131   :  { %v236_v26 = vpack.c.bf16 %v231_v25, %v231_v25 }
 0x133   :  { %237 = vst [vmem:[#allocation8] sm:$0xf] %v236_v26 }
 0x134   :  { %396 = shalt.err (!%p393_p0)
}
 0x135   :  { %s397_s26 = scalar_lea.hbm %s490_s3, 64 }
 0x136   :  { %p398_p1 = scmp.ne.s32.totalorder %s490_s3, %s397_s26  ;;  %p401_p2 = scmp.lt.u32.totalorder %s397_s26, %s490_s3 }
 0x138   :  { %p403_p3 = pnand %p401_p2, %p398_p1 }
 0x13a   :  { %406 = shalt.err (!%p403_p3)
}
 0x13b   :  { %247 = dma.vmem_to_hbm [thread:$0]  %s245_s22, 64, %s490_s3, [#allocation4]  }
 0x13c   :  { %411 = dma.done.wait [#allocation4], 64  }
 0x13d   :  { %412 = vsyncadd [#allocation4], 4294967232 }
 0x13e   :  { %251 = vsyncpa [#allocation3], 1 }
 0x13f   :  { %252 = vsyncpa [#allocation6], 1 }
 0x140   :  { %253 = vsyncpa [#allocation4], 1 }

</bundles_post_ra>
